<compile_context>
chip_gen: v6e
topology: v6e:2x2x1
jax: 0.10.0
libtpu: 0.0.40
codegen_flags: <defaults>
</compile_context>

<pallas_src>
import functools

import jax
import jax.numpy as jnp
from jax.experimental import pallas as pl
from jax.experimental.pallas import tpu as pltpu


def _critic_kernel(num_hidden, *refs):
    """refs = (xa_ref, w0, b0, w1, b1, ..., wq, bq, out_ref).

    Transposed batch-on-lanes layout:
      activations  h : (features, tb)   -- batch on the lane axis (lane-dense)
      weights      w : (fan_out, fan_in)
      biases       b : (fan_out, 1)     -- broadcast across lanes
      output       q : (n_out, tb)      -- lane-dense, unmasked store

    xa already contains [state_goal, action]^T; the 1/act_limit scaling is
    folded into the action columns of w0, so the kernel is a plain ReLU MLP
    plus a linear head:  h <- relu(w @ h + b),  q <- wq @ h + bq.
    """
    xa_ref = refs[0]
    out_ref = refs[-1]

    h = xa_ref[...]                                   # (in_dim, tb) f32
    idx = 1
    for _ in range(num_hidden):
        w = refs[idx][...]                            # (h_out, h_in)
        b = refs[idx + 1][...]                        # (h_out, 1)
        idx += 2
        h = jnp.maximum(
            jnp.dot(w, h, preferred_element_type=jnp.float32) + b, 0.0
        )

    wq = refs[idx][...]                               # (n_out, h_last)
    bq = refs[idx + 1][...]                           # (n_out, 1)
    # Single MXU pass with lane-dense N=tb; handles n_out=1 (single critic)
    # and n_out=2 (fused twin critic) identically.
    out_ref[...] = jnp.dot(wq, h, preferred_element_type=jnp.float32) + bq


def _choose_batch_tile(B, batch_tile):
    """Small B: one full-array block (grid=(1,), no per-step overhead).
    Large B: 128-lane-aligned tile chosen so the grid stays >= 2, letting the
    "parallel" axis shard across v7x's two TensorCores."""
    if B <= batch_tile:
        return B
    half = -(-B // 2)                 # cdiv(B, 2)
    half = -(-half // 128) * 128      # round up to a lane-aligned tile
    return max(128, min(batch_tile, half))


def critic_forward(x, action, params, *, batch_tile=4096):
    """Q(s, a) via one Pallas kernel. `params` comes from prepare_kernel_params()."""
    ws, bs = params["ws"], params["bs"]       # (fan_out, fan_in), (fan_out, 1)
    wq, bq = params["wq"], params["bq"]       # (n_out, h_last), (n_out, 1)
    num_hidden = len(ws)
    n_out = wq.shape[0]
    in_dim = ws[0].shape[1]
    B = x.shape[0]
    assert x.shape[1] + action.shape[1] == in_dim

    # Layer-0 concat + transpose done once outside the kernel (layout plumbing
    # only; the action scaling is already folded into ws[0]).
    xa_t = jnp.concatenate([x, action], axis=1).T.astype(jnp.float32)  # (in_dim, B)

    batch_tile = max(128, -(-int(batch_tile) // 128) * 128)
    tb = _choose_batch_tile(B, batch_tile)
    grid = (pl.cdiv(B, tb),)
    # NOTE: if B % tb != 0, the padded lanes of the last tile run garbage
    # through relu/matmul; those output columns are discarded by Pallas, and
    # no cross-batch reduction happens in-kernel, so this is benign.

    operands = [xa_t]
    in_specs = [pl.BlockSpec((in_dim, tb), lambda i: (0, i))]
    for w, b in zip(ws, bs):
        operands += [w, b]
        in_specs += [
            pl.BlockSpec(w.shape, lambda i: (0, 0)),   # resident, revisited block
            pl.BlockSpec(b.shape, lambda i: (0, 0)),
        ]
    operands += [wq, bq]
    in_specs += [
        pl.BlockSpec(wq.shape, lambda i: (0, 0)),
        pl.BlockSpec(bq.shape, lambda i: (0, 0)),
    ]
    out_specs = pl.BlockSpec((n_out, tb), lambda i: (0, i))

    # Explicit VMEM budget: (double-buffered) resident weights + streamed
    # xa/out tiles.  Kept well under v7x's 32 MiB scoped default / 64 MiB phys.
    weight_bytes = sum(int(a.size) * a.dtype.itemsize for a in operands[1:])
    stream_bytes = 2 * 4 * tb * (in_dim + n_out)
    assert 2 * weight_bytes + stream_bytes < 16 * 1024 * 1024, "VMEM budget exceeded"

    kernel = functools.partial(_critic_kernel, num_hidden)
    q_t = pl.pallas_call(
        kernel,
        grid=grid,
        in_specs=in_specs,
        out_specs=out_specs,
        out_shape=jax.ShapeDtypeStruct((n_out, B), jnp.float32),
        compiler_params=pltpu.CompilerParams(dimension_semantics=("parallel",)),
    )(*operands)
    return q_t.T                               # (B, n_out) for API compatibility


# ----------------------------------------------------------------------------
# Parameter construction / preparation (plain JAX, outside the kernel)
# ----------------------------------------------------------------------------

def init_critic_params(key, in_dim, hidden_layers):
    """torch.nn.Linear-style init (uniform +/- 1/sqrt(fan_in)); raw weights
    stored (fan_in, fan_out), biases (1, fan_out)."""
    dims = [in_dim] + list(hidden_layers)
    keys = jax.random.split(key, len(hidden_layers) + 1)

    def linear(k, fan_in, fan_out):
        kw, kb = jax.random.split(k)
        bound = 1.0 / float(fan_in) ** 0.5
        w = jax.random.uniform(kw, (fan_in, fan_out), jnp.float32, -bound, bound)
        b = jax.random.uniform(kb, (1, fan_out), jnp.float32, -bound, bound)
        return w, b

    hidden = [linear(keys[i], dims[i], dims[i + 1]) for i in range(len(hidden_layers))]
    wq, bq = linear(keys[-1], dims[-1], 1)
    return {"hidden": hidden, "q": (wq, bq)}


def prepare_kernel_params(raw, sg_dim, act_limit):
    """Fold the action scale into layer 0 and transpose everything into the
    batch-on-lanes layout: weights (fan_out, fan_in), biases (fan_out, 1),
    head (n_out, h_last) / (n_out, 1)."""
    ws, bs = [], []
    for li, (w, b) in enumerate(raw["hidden"]):       # w: (fan_in, fan_out)
        wt = w.T                                      # (fan_out, fan_in)
        if li == 0:
            wt = jnp.concatenate(
                [wt[:, :sg_dim], wt[:, sg_dim:] * (1.0 / float(act_limit))],
                axis=1,
            )
        ws.append(wt)
        bs.append(b.T)                                # (fan_out, 1)
    wq, bq = raw["q"]                                 # (h_last, n_out), (1, n_out)
    return {"ws": ws, "bs": bs, "wq": wq.T, "bq": bq.T}


def fuse_twin_critics(raw1, raw2):
    """Stack two same-topology critics into one wider network so a single
    pallas_call evaluates both (TD3 Q1/Q2 or target nets): layer-0 weights
    concatenate along the output axis, deeper layers are block-diagonal, and
    the head emits [q1, q2].  The zero blocks are free — K=N=64 still fits a
    single MXU pass — and keeping it one grid avoids re-paying launch/step
    overhead with a second call or grid axis."""
    fused_hidden = []
    for li, ((w1, b1), (w2, b2)) in enumerate(zip(raw1["hidden"], raw2["hidden"])):
        if li == 0:
            w = jnp.concatenate([w1, w2], axis=1)
        else:
            z12 = jnp.zeros((w1.shape[0], w2.shape[1]), w1.dtype)
            z21 = jnp.zeros((w2.shape[0], w1.shape[1]), w1.dtype)
            w = jnp.block([[w1, z12], [z21, w2]])
        fused_hidden.append((w, jnp.concatenate([b1, b2], axis=1)))
    (wq1, bq1), (wq2, bq2) = raw1["q"], raw2["q"]
    zq = jnp.zeros_like(wq1)
    wq = jnp.block([[wq1, zq], [zq, wq2]])
    bq = jnp.concatenate([bq1, bq2], axis=1)
    return {"hidden": fused_hidden, "q": (wq, bq)}


def critic_reference(x, action, raw, act_limit):
    """Plain-JAX replica of the PyTorch forward, for correctness checking."""
    h = jnp.concatenate([x, action / act_limit], axis=1)
    for w, b in raw["hidden"]:
        h = jax.nn.relu(h @ w + b)
    wq, bq = raw["q"]
    return h @ wq + bq


if __name__ == "__main__":
    # env_params: obs_dim=8, goal_dim=4, action_dim=4, act_limit=2.0; her=True
    # hidden_layers=[32, 32]; batch=2
    obs_dim, goal_dim, action_dim = 8, 4, 4
    act_limit = 2.0
    hidden_layers = [32, 32]
    B = 2
    sg_dim = obs_dim + goal_dim
    in_dim = sg_dim + action_dim

    key = jax.random.PRNGKey(0)
    k1, k2, kx, ka, kxb, kab = jax.random.split(key, 6)

    raw1 = init_critic_params(k1, in_dim, hidden_layers)
    raw2 = init_critic_params(k2, in_dim, hidden_layers)

    x = jax.random.normal(kx, (B, sg_dim), jnp.float32)
    action = jax.random.normal(ka, (B, action_dim), jnp.float32) * act_limit

    # --- single critic (matches the PyTorch module) ---
    params1 = prepare_kernel_params(raw1, sg_dim, act_limit)
    q = jax.block_until_ready(critic_forward(x, action, params1))
    q_ref = critic_reference(x, action, raw1, act_limit)
    assert q.shape == (B, 1)
    assert jnp.allclose(q, q_ref, atol=1e-5, rtol=1e-5)

    # --- fused twin critics: one kernel launch computes Q1 and Q2 ---
    fused = prepare_kernel_params(fuse_twin_critics(raw1, raw2), sg_dim, act_limit)
    q12 = jax.block_until_ready(critic_forward(x, action, fused))
    q2_ref = critic_reference(x, action, raw2, act_limit)
    assert q12.shape == (B, 2)
    assert jnp.allclose(q12[:, :1], q_ref, atol=1e-5, rtol=1e-5)
    assert jnp.allclose(q12[:, 1:], q2_ref, atol=1e-5, rtol=1e-5)

    # --- larger batch, multi-tile grid (exercises the lane-tiled path) ---
    Bb = 384
    xb = jax.random.normal(kxb, (Bb, sg_dim), jnp.float32)
    ab = jax.random.normal(kab, (Bb, action_dim), jnp.float32) * act_limit
    qb = jax.block_until_ready(critic_forward(xb, ab, params1, batch_tile=128))
    qb_ref = critic_reference(xb, ab, raw1, act_limit)
    assert qb.shape == (Bb, 1)
    assert jnp.allclose(qb, qb_ref, atol=1e-4, rtol=1e-4)

    print("KERNEL_OK")
</pallas_src>

<mosaic_0001>
module attributes {stable_mosaic.version = 11 : i64} {
  func.func @_critic_kernel(%arg0: i32, %arg1: memref<16x2xf32, #tpu.memory_space<vmem>>, %arg2: memref<32x16xf32, #tpu.memory_space<vmem>>, %arg3: memref<32x1xf32, #tpu.memory_space<vmem>>, %arg4: memref<32x32xf32, #tpu.memory_space<vmem>>, %arg5: memref<32x1xf32, #tpu.memory_space<vmem>>, %arg6: memref<1x32xf32, #tpu.memory_space<vmem>>, %arg7: memref<1x1xf32, #tpu.memory_space<vmem>>, %arg8: memref<1x2xf32, #tpu.memory_space<vmem>>) attributes {dimension_semantics = [#tpu.dimension_semantics<parallel>], iteration_bounds = array<i64: 1>, scalar_prefetch = 0 : i64, scratch_operands = 0 : i64, tpu.core_type = #tpu.core_type<tc>, window_params = [{transform_indices = @transform_0, window_bounds = array<i64: 16, 2>}, {pipeline_mode = #tpu.pipeline_mode<synchronous>, transform_indices = @transform_1, window_bounds = array<i64: 32, 16>}, {pipeline_mode = #tpu.pipeline_mode<synchronous>, transform_indices = @transform_2, window_bounds = array<i64: 32, 1>}, {pipeline_mode = #tpu.pipeline_mode<synchronous>, transform_indices = @transform_3, window_bounds = array<i64: 32, 32>}, {pipeline_mode = #tpu.pipeline_mode<synchronous>, transform_indices = @transform_4, window_bounds = array<i64: 32, 1>}, {pipeline_mode = #tpu.pipeline_mode<synchronous>, transform_indices = @transform_5, window_bounds = array<i64: 1, 32>}, {pipeline_mode = #tpu.pipeline_mode<synchronous>, transform_indices = @transform_6, window_bounds = array<i64: 1, 1>}, {transform_indices = @transform_7, window_bounds = array<i64: 1, 2>}]} {
    %c0 = arith.constant 0 : index
    %c0_0 = arith.constant 0 : index
    %0 = vector.load %arg1[%c0, %c0_0] : memref<16x2xf32, #tpu.memory_space<vmem>>, vector<16x2xf32>
    %c0_1 = arith.constant 0 : index
    %c0_2 = arith.constant 0 : index
    %1 = vector.load %arg2[%c0_1, %c0_2] : memref<32x16xf32, #tpu.memory_space<vmem>>, vector<32x16xf32>
    %c0_3 = arith.constant 0 : index
    %c0_4 = arith.constant 0 : index
    %2 = vector.load %arg3[%c0_3, %c0_4] : memref<32x1xf32, #tpu.memory_space<vmem>>, vector<32x1xf32>
    %cst = arith.constant dense<0.000000e+00> : vector<32x2xf32>
    %3 = tpu.matmul %1, %0, %cst {dimension_numbers = #tpu.dot_dimension_numbers<[1], [0], [0], [1], [0, 0, 1, 1], [], []>} : vector<32x16xf32>, vector<16x2xf32>, vector<32x2xf32> -> vector<32x2xf32>
    %4 = vector.broadcast %2 : vector<32x1xf32> to vector<32x2xf32>
    %5 = arith.addf %3, %4 : vector<32x2xf32>
    %cst_5 = arith.constant 0.000000e+00 : f32
    %6 = vector.broadcast %cst_5 : f32 to vector<32x2xf32>
    %7 = arith.maximumf %5, %6 : vector<32x2xf32>
    %c0_6 = arith.constant 0 : index
    %c0_7 = arith.constant 0 : index
    %8 = vector.load %arg4[%c0_6, %c0_7] : memref<32x32xf32, #tpu.memory_space<vmem>>, vector<32x32xf32>
    %c0_8 = arith.constant 0 : index
    %c0_9 = arith.constant 0 : index
    %9 = vector.load %arg5[%c0_8, %c0_9] : memref<32x1xf32, #tpu.memory_space<vmem>>, vector<32x1xf32>
    %cst_10 = arith.constant dense<0.000000e+00> : vector<32x2xf32>
    %10 = tpu.matmul %8, %7, %cst_10 {dimension_numbers = #tpu.dot_dimension_numbers<[1], [0], [0], [1], [0, 0, 1, 1], [], []>} : vector<32x32xf32>, vector<32x2xf32>, vector<32x2xf32> -> vector<32x2xf32>
    %11 = vector.broadcast %9 : vector<32x1xf32> to vector<32x2xf32>
    %12 = arith.addf %10, %11 : vector<32x2xf32>
    %cst_11 = arith.constant 0.000000e+00 : f32
    %13 = vector.broadcast %cst_11 : f32 to vector<32x2xf32>
    %14 = arith.maximumf %12, %13 : vector<32x2xf32>
    %c0_12 = arith.constant 0 : index
    %c0_13 = arith.constant 0 : index
    %15 = vector.load %arg6[%c0_12, %c0_13] : memref<1x32xf32, #tpu.memory_space<vmem>>, vector<1x32xf32>
    %c0_14 = arith.constant 0 : index
    %c0_15 = arith.constant 0 : index
    %16 = vector.load %arg7[%c0_14, %c0_15] : memref<1x1xf32, #tpu.memory_space<vmem>>, vector<1x1xf32>
    %cst_16 = arith.constant dense<0.000000e+00> : vector<1x2xf32>
    %17 = tpu.matmul %15, %14, %cst_16 {dimension_numbers = #tpu.dot_dimension_numbers<[1], [0], [0], [1], [0, 0, 1, 1], [], []>} : vector<1x32xf32>, vector<32x2xf32>, vector<1x2xf32> -> vector<1x2xf32>
    %18 = vector.broadcast %16 : vector<1x1xf32> to vector<1x2xf32>
    %19 = arith.addf %17, %18 : vector<1x2xf32>
    %c0_17 = arith.constant 0 : index
    %c0_18 = arith.constant 0 : index
    %20 = vector.load %arg8[%c0_17, %c0_18] : memref<1x2xf32, #tpu.memory_space<vmem>>, vector<1x2xf32>
    tpu.vector_store %arg8[%c0_17, %c0_18], %19 {strides = array<i32>} : memref<1x2xf32, #tpu.memory_space<vmem>>, vector<1x2xf32>,
    return
  }
  func.func @transform_0(%arg0: i32) -> (i32, i32) {
    %c0_i32 = arith.constant 0 : i32
    %c0_i32_0 = arith.constant 0 : i32
    return %c0_i32, %arg0 : i32, i32
  }
  func.func @transform_1(%arg0: i32) -> (i32, i32) {
    %c0_i32 = arith.constant 0 : i32
    %c0_i32_0 = arith.constant 0 : i32
    %c0_i32_1 = arith.constant 0 : i32
    return %c0_i32, %c0_i32_0 : i32, i32
  }
  func.func @transform_2(%arg0: i32) -> (i32, i32) {
    %c0_i32 = arith.constant 0 : i32
    %c0_i32_0 = arith.constant 0 : i32
    %c0_i32_1 = arith.constant 0 : i32
    return %c0_i32, %c0_i32_0 : i32, i32
  }
  func.func @transform_3(%arg0: i32) -> (i32, i32) {
    %c0_i32 = arith.constant 0 : i32
    %c0_i32_0 = arith.constant 0 : i32
    %c0_i32_1 = arith.constant 0 : i32
    return %c0_i32, %c0_i32_0 : i32, i32
  }
  func.func @transform_4(%arg0: i32) -> (i32, i32) {
    %c0_i32 = arith.constant 0 : i32
    %c0_i32_0 = arith.constant 0 : i32
    %c0_i32_1 = arith.constant 0 : i32
    return %c0_i32, %c0_i32_0 : i32, i32
  }
  func.func @transform_5(%arg0: i32) -> (i32, i32) {
    %c0_i32 = arith.constant 0 : i32
    %c0_i32_0 = arith.constant 0 : i32
    %c0_i32_1 = arith.constant 0 : i32
    return %c0_i32, %c0_i32_0 : i32, i32
  }
  func.func @transform_6(%arg0: i32) -> (i32, i32) {
    %c0_i32 = arith.constant 0 : i32
    %c0_i32_0 = arith.constant 0 : i32
    %c0_i32_1 = arith.constant 0 : i32
    return %c0_i32, %c0_i32_0 : i32, i32
  }
  func.func @transform_7(%arg0: i32) -> (i32, i32) {
    %c0_i32 = arith.constant 0 : i32
    %c0_i32_0 = arith.constant 0 : i32
    return %c0_i32, %arg0 : i32, i32
  }
}

</mosaic_0001>

<bundles_post_ra>
// kernel: tpu_custom_call.1
= control target key start
LH: loop header
LB: loop body
LE: loop exit
PB: predicated region body
PF: predicated region fallthrough
CT: control target
= control target key end

     0   :  { %s598_s0 = inlined_call_operand.vmem [shape: f32[16,2], index: 0, kind: input, shape index: {}]   ;;  %s599_s1 = inlined_call_operand.vmem [shape: f32[32,16], index: 1, kind: input, shape index: {}]   ;;  %s600_s2 = inlined_call_operand.vmem [shape: f32[32,1], index: 2, kind: input, shape index: {}]   ;;  %s601_s3 = inlined_call_operand.vmem [shape: f32[32,32], index: 3, kind: input, shape index: {}]   ;;  %s602_s4 = inlined_call_operand.vmem [shape: f32[32,1], index: 4, kind: input, shape index: {}]   ;;  %s603_s5 = inlined_call_operand.vmem [shape: f32[1,32], index: 5, kind: input, shape index: {}]   ;;  %s604_s6 = inlined_call_operand.<no memory space> [shape: f32[1,1], index: 6, kind: input, shape index: {}]   ;;  %s605_s7 = inlined_call_operand.hbm [shape: f32[1,2], index: 7, kind: output, shape index: {}]  }
   0x1   :  { %v12_v0 = vstv %s604_s6 }
   0x2   :  { %13 = vst [vmem:[#allocation2] sm:$0x1] %v12_v0 }
   0x3   :  { %v30_v1 = vld [vmem:[%s598_s0 + $0x8] sm:$0xff]  ;;  %v29_v2 = vld [vmem:[%s598_s0] sm:$0xff]  ;;  %vm59_vm0 = vcmask 130048   ;;  %v482_v5 = vmov 0   ;;  %v38_v6 = vld [vmem:[%s600_s2 + $0x18] sm:$0xff] }
   0x4   :  { %v31_v3 = vld [vmem:[%s599_s1] sm:$0xff]  ;;  %419 = vmatprep.subr.mxu0 %v30_v1  ;;  %v32_v4 = vld [vmem:[%s599_s1 + $0x8] sm:$0xff]  ;;  %458 = vset.pattern.permute.xlu0 %v482_v5  ;;  %v33_v7 = vld [vmem:[%s599_s1 + $0x10] sm:$0xff] }
   0x5   :  { %423 = vmatprep.mubr.msk.f32.mxu0 %vm59_vm0, %v31_v3  ;;  %420 = vmatpush3.msra.mxu0 %v30_v1  ;;  %v36_v8 = vld [vmem:[%s600_s2 + $0x8] sm:$0xff]  ;;  %v37_v9 = vld [vmem:[%s600_s2 + $0x10] sm:$0xff] }
   0x6   :  { %421 = vmatprep.subr.mxu0 %v29_v2  ;;  %56 = vperm.xlu0 %458, %v38_v6  }
   0x7   :  { %422 = vmatpush3.msra.mxu0 %v29_v2  ;;  %459 = vset.pattern.permute.xlu1 %v482_v5 }
   0x8   :  { %424 = vmatmul.mubr.msk.f32.vlgmr.msra.gmra.mxu0 %vm59_vm0, %v32_v4  ;;  %46 = vperm.xlu1 %459, %v36_v8  }
   0x9   :  { %14 = vsyncpa [#allocation4], 0  ;;  %426 = vmatprep.mubr.msk.f32.mxu0 %vm59_vm0, %v33_v7  ;;  %v34_v10 = vld [vmem:[%s599_s1 + $0x18] sm:$0xff]  ;;  %v35_v11 = vld [vmem:[%s600_s2] sm:$0xff]  ;;  %vm189_vm1 = vcmask 261120   ;;  %v483_v37 = vmov 0.0   ;;  %v298_v55 = vlaneseq }
   0xa   :  { %51 = vperm.xlu0 %458, %v37_v9   ;;  %v168_v12 = vld [vmem:[%s602_s4 + $0x18] sm:$0xff]  ;;  %v167_v13 = vld [vmem:[%s602_s4 + $0x10] sm:$0xff]  ;;  %v166_v14 = vld [vmem:[%s602_s4 + $0x8] sm:$0xff]  ;;  %443 = vmatprep.subr.mxu0 %v483_v37  ;;  %vm484_vm2 = vmmov 0   ;;  %s485_s11 = smov [#allocation3]   ;;  %vm375_vm3 = vcmask 8192  }
   0xb   :  { %v165_v15 = vld [vmem:[%s602_s4] sm:$0xff]  ;;  %v162_v34 = vld [vmem:[%s601_s3 + $0x8] sm:$0xff]  ;;  %v163_v35 = vld [vmem:[%s601_s3 + $0x10] sm:$0xff]  ;;  %v299_v56 = vshrl.u32 %v298_v55, 7  ;;  %s383_s0 = sshll.u32 %s485_s11, 4  ;;  %s384_s0 = int_to_ptr.vmem [resolvable:$true] %s383_s0 }
   0xc   :  { %427 = vmatmul.mubr.msk.f32.gmra.mxu0 %vm59_vm0, %v34_v10  ;;  %41 = vperm.xlu1 %459, %v35_v11   ;;  %v292_v16 = vld [vmem:[#allocation2] sm:$0x1]  ;;  %v164_v36 = vld [vmem:[%s601_s3 + $0x18] sm:$0xff]  ;;  %s460_s12 = scalar_lea.vmem %s384_s0, 16  ;;  %p465_p1 = scmp.lt.s32.totalorder %s384_s0, %s384_s0 }
   0xd   :  { %v161_v17 = vld [vmem:[%s601_s3] sm:$0xff]  ;;  %451 = vmatprep.mubr.msk.f32.mxu0 %vm484_vm2, %v483_v37  ;;  %v300_v57 = vsub.s32 0, %v299_v56  ;;  %p461_p0 = scmp.ne.s32.totalorder %s384_s0, %s460_s12 }
   0xe   :  { %186 = vperm.xlu0 %458, %v168_v12   ;;  %437 = vmatprep.mubr.msk.f32.mxu1 %vm189_vm1, %v161_v17  ;;  %v291_v54 = vld [vmem:[%s603_s5] sm:$0x1]  ;;  %s464_s5 = scalar_lea.vmem %s384_s0, 32 }
   0xf   :  { %p466_p2 = scmp.lt.s32.totalorder %s464_s5, %s460_s12 }
  0x10   :  { %181 = vperm.xlu1 %459, %v167_v13  }
  0x11   :  { %p467_p3 = por %p466_p2, %p465_p1 }
  0x12   :  { %176 = vperm.xlu0 %458, %v166_v14  }
  0x13   :  { %p468_p4 = pnand %p467_p3, %p461_p0 }
  0x14   :  { %171 = vperm.xlu1 %459, %v165_v15  }
  0x16   :  { %295 = vperm.xlu0 %458, %v292_v16  }
  0x81   :  { %v57_v18 = vpop.permute.xlu0 %56 }
  0x83   :  { %v47_v20 = vpop.permute.xlu1 %46 }
  0x85   :  { %v52_v24 = vpop.permute.xlu0 %51 }
  0x87   :  { %v42_v29 = vpop.permute.xlu1 %41 }
  0x89   :  { %v187_v38 = vpop.permute.xlu0 %186 }
  0x8b   :  { %v182_v40 = vpop.permute.xlu1 %181 }
  0x8d   :  { %v177_v44 = vpop.permute.xlu0 %176 }
  0x8f   :  { %v172_v49 = vpop.permute.xlu1 %171 }
  0x91   :  { %v296_v58 = vpop.permute.xlu0 %295 }
  0x92   :  { %v301_v59 = vrot.slane %v296_v58, %v300_v57 }
  0xc8   :  { %v425_v19 = vpop.f32.mrf.mxu0 }
  0xc9   :  { %v144_v26 = vadd.f32 %v425_v19, %v47_v20 }
  0xca   :  { %v138_v21 = vpop.f32.mrf.mxu0 }
  0xcb   :  { %v139_v30 = vadd.f32 %v138_v21, %v42_v29  ;;  %v158_v32 = vmax.f32 %v144_v26, 0.0 }
  0xcc   :  { %v428_v22 = vpop.f32.mrf.mxu0 }
  0xcd   :  { %v154_v23 = vadd.f32 %v428_v22, %v57_v18  ;;  %v157_v33 = vmax.f32 %v139_v30, 0.0 }
  0xce   :  { %v148_v25 = vpop.f32.mrf.mxu0 }
  0xcf   :  { %v160_v27 = vmax.f32 %v154_v23, 0.0  ;;  %v149_v28 = vadd.f32 %v148_v25, %v52_v24 }
  0xd1   :  { %v159_v31 = vmax.f32 %v149_v28, 0.0  ;;  %429 = vmatprep.subr.mxu1 %v160_v27 }
  0xd2   :  { %430 = vmatpush3.msra.mxu1 %v160_v27 }
  0xd3   :  { %431 = vmatprep.subr.mxu1 %v159_v31 }
  0xd4   :  { %432 = vmatpush3.msra.mxu1 %v159_v31 }
  0xd5   :  { %433 = vmatprep.subr.mxu1 %v158_v32 }
  0xd6   :  { %434 = vmatpush3.msra.mxu1 %v158_v32 }
  0xd7   :  { %435 = vmatprep.subr.mxu1 %v157_v33 }
  0xd8   :  { %436 = vmatpush3.msra.mxu1 %v157_v33 }
  0xd9   :  { %438 = vmatmul.mubr.msk.f32.vlgmr.msra.gmra.mxu1 %vm189_vm1, %v162_v34 }
  0xda   :  { %440 = vmatprep.mubr.msk.f32.mxu1 %vm189_vm1, %v163_v35 }
  0xdd   :  { %441 = vmatmul.mubr.msk.f32.gmra.mxu1 %vm189_vm1, %v164_v36 }
 0x199   :  { %v439_v39 = vpop.f32.mrf.mxu1 }
 0x19a   :  { %v274_v46 = vadd.f32 %v439_v39, %v177_v44 }
 0x19b   :  { %v268_v41 = vpop.f32.mrf.mxu1 }
 0x19c   :  { %v269_v50 = vadd.f32 %v268_v41, %v172_v49  ;;  %v288_v52 = vmax.f32 %v274_v46, 0.0 }
 0x19d   :  { %v442_v42 = vpop.f32.mrf.mxu1 }
 0x19e   :  { %v284_v43 = vadd.f32 %v442_v42, %v187_v38  ;;  %v287_v53 = vmax.f32 %v269_v50, 0.0 }
 0x19f   :  { %v278_v45 = vpop.f32.mrf.mxu1 }
 0x1a0   :  { %v290_v47 = vmax.f32 %v284_v43, 0.0  ;;  %v279_v48 = vadd.f32 %v278_v45, %v182_v40 }
 0x1a2   :  { %v289_v51 = vmax.f32 %v279_v48, 0.0  ;;  %444 = vmatpush3.msra.mxu0 %v290_v47 }
 0x1a3   :  { %445 = vmatprep.subr.mxu0 %v483_v37 }
 0x1a4   :  { %446 = vmatpush3.msra.mxu0 %v289_v51 }
 0x1a5   :  { %447 = vmatprep.subr.mxu0 %v483_v37 }
 0x1a6   :  { %448 = vmatpush3.msra.mxu0 %v288_v52 }
 0x1a7   :  { %449 = vmatprep.subr.mxu0 %v483_v37 }
 0x1a8   :  { %450 = vmatpush3.msra.mxu0 %v287_v53 }
 0x1a9   :  { %452 = vmatmul.mubr.msk.f32.vlgmr.msra.gmra.mxu0 %vm189_vm1, %v291_v54 }
 0x269   :  { %v371_v60 = vpop.f32.mrf.mxu0 }
 0x26a   :  { %v372_v61 = vadd.f32 %v371_v60, %v301_v59 }
 0x26b   :  { %v453_v62 = vpop.f32.mrf.mxu0 }
 0x26c   :  { %376 = vst.msk [vmem:[#allocation3] sm:$0x1] %vm375_vm3, %v372_v61 }
 0x26d   :  { %471 = shalt.err (!%p468_p4)
}
 0x26e   :  { %386 = dma.vmem_to_hbm [thread:$0]  %s384_s0, 16, %s605_s7, [#allocation4]  }
 0x26f   :  { %480 = dma.done.wait [#allocation4], 16  }
 0x270   :  { %481 = vsyncadd [#allocation4], 4294967280 }
 0x271   :  { %390 = vsyncpa [#allocation4], 1 }

</bundles_post_ra>
